<compile_context>
chip_gen: v5e
topology: v5e:2x2
jax: 0.10.0
libtpu: 0.0.40
codegen_flags: <defaults>
</compile_context>

<pallas_src>
import jax
import jax.numpy as jnp
from jax import lax
from jax.experimental import pallas as pl
from jax.experimental.pallas import tpu as pltpu


# ----------------------------- Pallas kernels -------------------------------

def _conv_bn_relu_kernel(p_ref, w_ref, shift_ref, o_ref):
    # (Cout, K) @ (K, tm) on the MXU (bf16 in, f32 acc), fused BN shift + ReLU.
    acc = jnp.dot(w_ref[...], p_ref[...], preferred_element_type=jnp.float32)
    o_ref[...] = jnp.maximum(acc + shift_ref[...], 0.0).astype(o_ref.dtype)


def _conv_bn_add_relu_kernel(p_ref, w_ref, shift_ref, res_ref, o_ref):
    # Same as above plus fused residual (shortcut) add, all epilogue math in f32.
    acc = jnp.dot(w_ref[...], p_ref[...], preferred_element_type=jnp.float32)
    out = acc + shift_ref[...] + res_ref[...]
    o_ref[...] = jnp.maximum(out, 0.0).astype(o_ref.dtype)


def _tile_and_pad(M, K, Cout):
    """Pick a lane-dense tile along M and the padded M extent it implies."""
    Mp = -(-M // 128) * 128                       # lane-dense minimum
    if Mp <= 128:
        return Mp, Mp
    # Prefer >=2 grid blocks (v7x megacore), tiles up to 1024 lanes.
    tm = max(128, min(1024, (Mp // 2) // 128 * 128))

    # Cap double-buffered per-step VMEM footprint (patches bf16, res/out f32).
    def footprint(t):
        return 2 * (K * t * 2 + 2 * Cout * t * 4)

    while tm > 128 and footprint(tm) > 24 * 1024 * 1024:
        tm -= 128
    Mp = -(-Mp // tm) * tm
    return tm, Mp


def _fused_conv_bn_relu(patches_T, w_scaled, shift, residual_T=None,
                        out_dtype=jnp.float32):
    """relu(w_scaled @ patches_T + shift (+ residual_T)), lane-dense (Cout, M)."""
    K, M = patches_T.shape
    Cout = w_scaled.shape[0]
    tm, Mp = _tile_and_pad(M, K, Cout)
    if Mp != M:
        patches_T = jnp.pad(patches_T, ((0, 0), (0, Mp - M)))
        if residual_T is not None:
            residual_T = jnp.pad(residual_T, ((0, 0), (0, Mp - M)))

    in_specs = [
        pl.BlockSpec((K, tm), lambda i: (0, i)),       # im2col patches (bf16)
        pl.BlockSpec((Cout, K), lambda i: (0, 0)),     # BN-scaled weights (bf16)
        pl.BlockSpec((Cout, 1), lambda i: (0, 0)),     # BN shift (f32)
    ]
    args = [patches_T, w_scaled, shift.reshape(Cout, 1).astype(jnp.float32)]
    if residual_T is None:
        kernel = _conv_bn_relu_kernel
    else:
        kernel = _conv_bn_add_relu_kernel
        in_specs.append(pl.BlockSpec((Cout, tm), lambda i: (0, i)))
        args.append(residual_T.astype(jnp.float32))

    out = pl.pallas_call(
        kernel,
        out_shape=jax.ShapeDtypeStruct((Cout, Mp), out_dtype),
        grid_spec=pltpu.PrefetchScalarGridSpec(
            num_scalar_prefetch=0,
            grid=(Mp // tm,),
            in_specs=in_specs,
            out_specs=pl.BlockSpec((Cout, tm), lambda i: (0, i)),
        ),
        compiler_params=pltpu.CompilerParams(
            dimension_semantics=("parallel",)),
    )(*args)
    return out[:, :M] if Mp != M else out


# ------------------------------- JAX glue -----------------------------------

def _im2col_T(x_nhwc, stride):
    """3x3, pad=1 patch extraction -> (9*C, N*Ho*Wo): K on sublanes, M on lanes."""
    N, H, W, C = x_nhwc.shape
    xp = jnp.pad(x_nhwc, ((0, 0), (1, 1), (1, 1), (0, 0)))
    Ho = (H + 2 - 3) // stride + 1
    Wo = (W + 2 - 3) // stride + 1
    cols = []
    for di in range(3):
        for dj in range(3):
            sl = xp[:, di:di + stride * (Ho - 1) + 1:stride,
                    dj:dj + stride * (Wo - 1) + 1:stride, :]
            cols.append(sl)
    patches = jnp.concatenate(cols, axis=-1)        # (N,Ho,Wo,9C), order (di,dj,ci)
    patches = patches.reshape(N * Ho * Wo, 9 * C)
    return patches.T, (N, Ho, Wo)                   # (9C, M)


def _fold_bn(bn, eps=1e-5):
    # eval-mode BatchNorm folded to an affine: y = x*scale + shift
    gamma, beta, mean, var = bn
    scale = gamma / jnp.sqrt(var + eps)
    shift = beta - mean * scale
    return scale, shift


def _w_to_mat_T(w):
    # (Cout, Cin, 3, 3) -> (Cout, 9*Cin), matching im2col's (di, dj, ci) K order.
    Cout = w.shape[0]
    return jnp.transpose(w, (0, 2, 3, 1)).reshape(Cout, -1)


def basic_block_forward(x_nchw, params, stride):
    """Pallas implementation of BasicBlock.forward (option 'A' shortcut)."""
    N, Cin, H, W = x_nchw.shape
    planes = params["conv1_w"].shape[0]
    x_nhwc = jnp.transpose(x_nchw, (0, 2, 3, 1))

    # out1 = relu(bn1(conv1(x)))  -- BN scale folded into bf16 weights, no residual.
    s1, b1 = _fold_bn(params["bn1"])
    w1 = (_w_to_mat_T(params["conv1_w"]) * s1[:, None]).astype(jnp.bfloat16)
    p1, (_, Ho, Wo) = _im2col_T(x_nhwc, stride)
    out1_T = _fused_conv_bn_relu(p1.astype(jnp.bfloat16), w1, b1,
                                 out_dtype=jnp.bfloat16)
    out1_nhwc = out1_T.T.reshape(N, Ho, Wo, planes)

    # shortcut: identity, or option 'A' (::2 spatial subsample + zero channel pad)
    if stride != 1 or Cin != planes:
        sc = x_nchw[:, :, ::2, ::2]
        pad = planes // 4
        sc = jnp.pad(sc, ((0, 0), (pad, pad), (0, 0), (0, 0)))
        sc_nhwc = jnp.transpose(sc, (0, 2, 3, 1))
    else:
        sc_nhwc = x_nhwc
    sc_T = sc_nhwc.reshape(N * Ho * Wo, planes).T    # (planes, M), f32

    # out = relu(bn2(conv2(out1)) + shortcut)
    s2, b2 = _fold_bn(params["bn2"])
    w2 = (_w_to_mat_T(params["conv2_w"]) * s2[:, None]).astype(jnp.bfloat16)
    p2, _ = _im2col_T(out1_nhwc, 1)
    out2_T = _fused_conv_bn_relu(p2.astype(jnp.bfloat16), w2, b2,
                                 residual_T=sc_T, out_dtype=jnp.float32)
    out2 = out2_T.reshape(planes, N, Ho, Wo)
    return jnp.transpose(out2, (1, 0, 2, 3))          # back to NCHW


# ------------------------ pure-JAX reference (check) ------------------------

def _ref_forward(x, params, stride):
    def conv(x, w, s):
        return lax.conv_general_dilated(
            x, w, (s, s), ((1, 1), (1, 1)),
            dimension_numbers=("NCHW", "OIHW", "NCHW"))

    def bn(x, p, eps=1e-5):
        g, b, m, v = p
        return ((x - m[None, :, None, None]) /
                jnp.sqrt(v[None, :, None, None] + eps) *
                g[None, :, None, None] + b[None, :, None, None])

    planes = params["conv1_w"].shape[0]
    Cin = x.shape[1]
    out = jax.nn.relu(bn(conv(x, params["conv1_w"], stride), params["bn1"]))
    out = bn(conv(out, params["conv2_w"], 1), params["bn2"])
    if stride != 1 or Cin != planes:
        sc = x[:, :, ::2, ::2]
        pad = planes // 4
        sc = jnp.pad(sc, ((0, 0), (pad, pad), (0, 0), (0, 0)))
    else:
        sc = x
    return jax.nn.relu(out + sc)


# --------------------------------- driver -----------------------------------

def _make_params(key, in_planes, planes):
    ks = jax.random.split(key, 10)
    # TODO(synk): BatchNorm is evaluated in inference mode with fixed running
    # stats; PyTorch training-mode batch statistics are not reproduced.
    return {
        "conv1_w": 0.1 * jax.random.normal(ks[0], (planes, in_planes, 3, 3), jnp.float32),
        "bn1": (1.0 + 0.1 * jax.random.normal(ks[1], (planes,), jnp.float32),   # gamma
                0.05 * jax.random.normal(ks[2], (planes,), jnp.float32),         # beta
                0.02 * jax.random.normal(ks[3], (planes,), jnp.float32),         # running_mean
                1.0 + 0.1 * jax.random.uniform(ks[4], (planes,), jnp.float32)),  # running_var
        "conv2_w": 0.1 * jax.random.normal(ks[5], (planes, planes, 3, 3), jnp.float32),
        "bn2": (1.0 + 0.1 * jax.random.normal(ks[6], (planes,), jnp.float32),
                0.05 * jax.random.normal(ks[7], (planes,), jnp.float32),
                0.02 * jax.random.normal(ks[8], (planes,), jnp.float32),
                1.0 + 0.1 * jax.random.uniform(ks[9], (planes,), jnp.float32)),
    }


if __name__ == "__main__":
    key = jax.random.PRNGKey(0)
    fwd = jax.jit(basic_block_forward, static_argnames=("stride",))

    # bf16 MXU operands -> compare to the f32 reference at bf16-level tolerance.
    ATOL = RTOL = 5e-2

    # Case 1: downsampling block (stride=2, channel expansion -> option 'A' shortcut)
    k_x1, k_p1, k_x2, k_p2 = jax.random.split(key, 4)
    x1 = jax.random.normal(k_x1, (2, 8, 16, 16), jnp.float32)   # NCHW
    params1 = _make_params(k_p1, in_planes=8, planes=16)
    out1 = jax.block_until_ready(fwd(x1, params1, stride=2))
    ref1 = _ref_forward(x1, params1, 2)
    assert out1.shape == (2, 16, 8, 8)
    assert jnp.allclose(out1, ref1, atol=ATOL, rtol=RTOL)

    # Case 2: identity-shortcut block (stride=1, same planes)
    x2 = jax.random.normal(k_x2, (2, 16, 16, 16), jnp.float32)  # NCHW
    params2 = _make_params(k_p2, in_planes=16, planes=16)
    out2 = jax.block_until_ready(fwd(x2, params2, stride=1))
    ref2 = _ref_forward(x2, params2, 1)
    assert out2.shape == (2, 16, 16, 16)
    assert jnp.allclose(out2, ref2, atol=ATOL, rtol=RTOL)

    print("KERNEL_OK")
</pallas_src>

<mosaic_0001>
module attributes {stable_mosaic.version = 11 : i64} {
  func.func @_conv_bn_relu_kernel(%arg0: i32, %arg1: memref<72x128xbf16, #tpu.memory_space<vmem>>, %arg2: memref<16x72xbf16, #tpu.memory_space<vmem>>, %arg3: memref<16x1xf32, #tpu.memory_space<vmem>>, %arg4: memref<16x128xbf16, #tpu.memory_space<vmem>>) attributes {dimension_semantics = [#tpu.dimension_semantics<parallel>], iteration_bounds = array<i64: 1>, scalar_prefetch = 0 : i64, scratch_operands = 0 : i64, tpu.core_type = #tpu.core_type<tc>, window_params = [{transform_indices = @transform_0, window_bounds = array<i64: 72, 128>}, {pipeline_mode = #tpu.pipeline_mode<synchronous>, transform_indices = @transform_1, window_bounds = array<i64: 16, 72>}, {pipeline_mode = #tpu.pipeline_mode<synchronous>, transform_indices = @transform_2, window_bounds = array<i64: 16, 1>}, {transform_indices = @transform_3, window_bounds = array<i64: 16, 128>}]} {
    %c0 = arith.constant 0 : index
    %c0_0 = arith.constant 0 : index
    %0 = vector.load %arg2[%c0, %c0_0] : memref<16x72xbf16, #tpu.memory_space<vmem>>, vector<16x72xbf16>
    %c0_1 = arith.constant 0 : index
    %c0_2 = arith.constant 0 : index
    %1 = vector.load %arg1[%c0_1, %c0_2] : memref<72x128xbf16, #tpu.memory_space<vmem>>, vector<72x128xbf16>
    %cst = arith.constant dense<0.000000e+00> : vector<16x128xf32>
    %2 = tpu.matmul %0, %1, %cst {dimension_numbers = #tpu.dot_dimension_numbers<[1], [0], [0], [1], [0, 0, 1, 1], [], []>} : vector<16x72xbf16>, vector<72x128xbf16>, vector<16x128xf32> -> vector<16x128xf32>
    %c0_3 = arith.constant 0 : index
    %c0_4 = arith.constant 0 : index
    %3 = vector.load %arg3[%c0_3, %c0_4] : memref<16x1xf32, #tpu.memory_space<vmem>>, vector<16x1xf32>
    %4 = vector.broadcast %3 : vector<16x1xf32> to vector<16x128xf32>
    %5 = arith.addf %2, %4 : vector<16x128xf32>
    %cst_5 = arith.constant 0.000000e+00 : f32
    %6 = vector.broadcast %cst_5 : f32 to vector<16x128xf32>
    %7 = arith.maximumf %5, %6 : vector<16x128xf32>
    %8 = arith.truncf %7 : vector<16x128xf32> to vector<16x128xbf16>
    %c0_6 = arith.constant 0 : index
    %c0_7 = arith.constant 0 : index
    %9 = vector.load %arg4[%c0_6, %c0_7] : memref<16x128xbf16, #tpu.memory_space<vmem>>, vector<16x128xbf16>
    tpu.vector_store %arg4[%c0_6, %c0_7], %8 {strides = array<i32>} : memref<16x128xbf16, #tpu.memory_space<vmem>>, vector<16x128xbf16>,
    return
  }
  func.func @transform_0(%arg0: i32) -> (i32, i32) {
    %c0_i32 = arith.constant 0 : i32
    %c0_i32_0 = arith.constant 0 : i32
    return %c0_i32, %arg0 : i32, i32
  }
  func.func @transform_1(%arg0: i32) -> (i32, i32) {
    %c0_i32 = arith.constant 0 : i32
    %c0_i32_0 = arith.constant 0 : i32
    %c0_i32_1 = arith.constant 0 : i32
    return %c0_i32, %c0_i32_0 : i32, i32
  }
  func.func @transform_2(%arg0: i32) -> (i32, i32) {
    %c0_i32 = arith.constant 0 : i32
    %c0_i32_0 = arith.constant 0 : i32
    %c0_i32_1 = arith.constant 0 : i32
    return %c0_i32, %c0_i32_0 : i32, i32
  }
  func.func @transform_3(%arg0: i32) -> (i32, i32) {
    %c0_i32 = arith.constant 0 : i32
    %c0_i32_0 = arith.constant 0 : i32
    return %c0_i32, %arg0 : i32, i32
  }
}

module attributes {stable_mosaic.version = 11 : i64} {
  func.func @_conv_bn_add_relu_kernel(%arg0: i32, %arg1: memref<144x128xbf16, #tpu.memory_space<vmem>>, %arg2: memref<16x144xbf16, #tpu.memory_space<vmem>>, %arg3: memref<16x1xf32, #tpu.memory_space<vmem>>, %arg4: memref<16x128xf32, #tpu.memory_space<vmem>>, %arg5: memref<16x128xf32, #tpu.memory_space<vmem>>) attributes {dimension_semantics = [#tpu.dimension_semantics<parallel>], iteration_bounds = array<i64: 1>, scalar_prefetch = 0 : i64, scratch_operands = 0 : i64, tpu.core_type = #tpu.core_type<tc>, window_params = [{transform_indices = @transform_0, window_bounds = array<i64: 144, 128>}, {pipeline_mode = #tpu.pipeline_mode<synchronous>, transform_indices = @transform_1, window_bounds = array<i64: 16, 144>}, {pipeline_mode = #tpu.pipeline_mode<synchronous>, transform_indices = @transform_2, window_bounds = array<i64: 16, 1>}, {transform_indices = @transform_3, window_bounds = array<i64: 16, 128>}, {transform_indices = @transform_4, window_bounds = array<i64: 16, 128>}]} {
    %c0 = arith.constant 0 : index
    %c0_0 = arith.constant 0 : index
    %0 = vector.load %arg2[%c0, %c0_0] : memref<16x144xbf16, #tpu.memory_space<vmem>>, vector<16x144xbf16>
    %c0_1 = arith.constant 0 : index
    %c0_2 = arith.constant 0 : index
    %1 = vector.load %arg1[%c0_1, %c0_2] : memref<144x128xbf16, #tpu.memory_space<vmem>>, vector<144x128xbf16>
    %cst = arith.constant dense<0.000000e+00> : vector<16x128xf32>
    %2 = tpu.matmul %0, %1, %cst {dimension_numbers = #tpu.dot_dimension_numbers<[1], [0], [0], [1], [0, 0, 1, 1], [], []>} : vector<16x144xbf16>, vector<144x128xbf16>, vector<16x128xf32> -> vector<16x128xf32>
    %c0_3 = arith.constant 0 : index
    %c0_4 = arith.constant 0 : index
    %3 = vector.load %arg3[%c0_3, %c0_4] : memref<16x1xf32, #tpu.memory_space<vmem>>, vector<16x1xf32>
    %4 = vector.broadcast %3 : vector<16x1xf32> to vector<16x128xf32>
    %5 = arith.addf %2, %4 : vector<16x128xf32>
    %c0_5 = arith.constant 0 : index
    %c0_6 = arith.constant 0 : index
    %6 = vector.load %arg4[%c0_5, %c0_6] : memref<16x128xf32, #tpu.memory_space<vmem>>, vector<16x128xf32>
    %7 = arith.addf %5, %6 : vector<16x128xf32>
    %cst_7 = arith.constant 0.000000e+00 : f32
    %8 = vector.broadcast %cst_7 : f32 to vector<16x128xf32>
    %9 = arith.maximumf %7, %8 : vector<16x128xf32>
    %c0_8 = arith.constant 0 : index
    %c0_9 = arith.constant 0 : index
    %10 = vector.load %arg5[%c0_8, %c0_9] : memref<16x128xf32, #tpu.memory_space<vmem>>, vector<16x128xf32>
    tpu.vector_store %arg5[%c0_8, %c0_9], %9 {strides = array<i32>} : memref<16x128xf32, #tpu.memory_space<vmem>>, vector<16x128xf32>,
    return
  }
  func.func @transform_0(%arg0: i32) -> (i32, i32) {
    %c0_i32 = arith.constant 0 : i32
    %c0_i32_0 = arith.constant 0 : i32
    return %c0_i32, %arg0 : i32, i32
  }
  func.func @transform_1(%arg0: i32) -> (i32, i32) {
    %c0_i32 = arith.constant 0 : i32
    %c0_i32_0 = arith.constant 0 : i32
    %c0_i32_1 = arith.constant 0 : i32
    return %c0_i32, %c0_i32_0 : i32, i32
  }
  func.func @transform_2(%arg0: i32) -> (i32, i32) {
    %c0_i32 = arith.constant 0 : i32
    %c0_i32_0 = arith.constant 0 : i32
    %c0_i32_1 = arith.constant 0 : i32
    return %c0_i32, %c0_i32_0 : i32, i32
  }
  func.func @transform_3(%arg0: i32) -> (i32, i32) {
    %c0_i32 = arith.constant 0 : i32
    %c0_i32_0 = arith.constant 0 : i32
    return %c0_i32, %arg0 : i32, i32
  }
  func.func @transform_4(%arg0: i32) -> (i32, i32) {
    %c0_i32 = arith.constant 0 : i32
    %c0_i32_0 = arith.constant 0 : i32
    return %c0_i32, %arg0 : i32, i32
  }
}

</mosaic_0001>

<bundles_post_ra>
// kernel: basic_block_forward.2
= control target key start
LH: loop header
LB: loop body
LE: loop exit
PB: predicated region body
PF: predicated region fallthrough
CT: control target
= control target key end

     0   :  { %v135_v1 = vmov 0   ;;  %vm74_vm0 = vcmask 1043456   ;;  %vm70_vm1 = vcmask 588800   ;;  %s183_s0 = inlined_call_operand.vmem [shape: bf16[72,128], index: 0, kind: input, shape index: {}]   ;;  %s184_s2 = inlined_call_operand.vmem [shape: f32[16,1], index: 2, kind: input, shape index: {}]   ;;  %s185_s1 = inlined_call_operand.vmem [shape: bf16[16,72], index: 1, kind: input, shape index: {}]   ;;  %s186_s3 = inlined_call_operand.vmem [shape: bf16[16,128], index: 3, kind: output, shape index: {}]  }
   0x1   :  { %v25_v0 = vld [vmem:[%s183_s0 + $0x20] sm:$0xf]  ;;  %134 = vset.pattern.permute.xlu0 %v135_v1  ;;  %v127_v6 = vld [vmem:[%s183_s0 + $0x18] sm:$0xff]  ;;  %v27_v7 = vld [vmem:[%s184_s2 + $0x8] sm:$0xff] }
   0x2   :  { %v60_v2 = vunpack.c.l.b16 %v25_v0  ;;  %v26_v3 = vld [vmem:[%s184_s2] sm:$0xff]  ;;  %v126_v8 = vld [vmem:[%s183_s0 + $0x10] sm:$0xff]  ;;  %v125_v9 = vld [vmem:[%s183_s0 + $0x8] sm:$0xff] }
   0x3   :  { %30 = vperm.xlu0 %134, %v26_v3   ;;  %v124_v10 = vld [vmem:[%s183_s0] sm:$0xff] }
   0x4   :  { %v65_v4 = vpack.c.b16 %v60_v2, %v60_v2  ;;  %v123_v11 = vld [vmem:[%s185_s1] sm:$0xff] }
   0x6   :  { %v76_v5 = vsel %vm74_vm0, %v65_v4, 0 }
   0x7   :  { %81 = vmatpush.bf16.msra.mxu0 %v76_v5 }
   0xb   :  { %82 = vmatpush.bf16.msra.mxu0 %v127_v6  ;;  %35 = vperm.xlu0 %134, %v27_v7  }
   0xf   :  { %83 = vmatpush.bf16.msra.mxu0 %v126_v8 }
  0x13   :  { %84 = vmatpush.bf16.msra.mxu0 %v125_v9 }
  0x17   :  { %85 = vmatpush.bf16.msra.mxu0 %v124_v10 }
  0x1a   :  { %122 = vmatmul.msk.bf16.vlgmr.msra.gmra.mxu0 %vm70_vm1, %v123_v11 }
  0x75   :  { %v31_v12 = vpop.permute.xlu0 %30 }
  0x7d   :  { %v36_v15 = vpop.permute.xlu0 %35 }
  0x97   :  { %v87_v13 = vpop.f32.mrf.mxu0 }
  0x98   :  { %v88_v14 = vadd.f32 %v87_v13, %v31_v12 }
  0x9a   :  { %v92_v18 = vmax.f32 %v88_v14, 0.0 }
  0x9f   :  { %v89_v16 = vpop.f32.mrf.mxu0 }
  0xa0   :  { %v90_v17 = vadd.f32 %v89_v16, %v36_v15 }
  0xa2   :  { %v93_v19 = vmax.f32 %v90_v17, 0.0 }
  0xa4   :  { %v131_v20 = vpack.c.bf16 %v93_v19, %v92_v18 }
  0xa6   :  { %132 = vst [vmem:[%s186_s3] sm:$0xff] %v131_v20  }

// kernel: basic_block_forward.3
= control target key start
LH: loop header
LB: loop body
LE: loop exit
PB: predicated region body
PF: predicated region fallthrough
CT: control target
= control target key end

     0   :  { %v215_v4 = vmov 0   ;;  %vm113_vm0 = vcmask 130048   ;;  %s298_s0 = inlined_call_operand.vmem [shape: bf16[144,128], index: 0, kind: input, shape index: {}]   ;;  %s299_s1 = inlined_call_operand.vmem [shape: bf16[16,144], index: 1, kind: input, shape index: {}]   ;;  %s300_s2 = inlined_call_operand.vmem [shape: f32[16,1], index: 2, kind: input, shape index: {}]   ;;  %s301_s3 = inlined_call_operand.vmem [shape: f32[16,128], index: 3, kind: input, shape index: {}]   ;;  %s302_s4 = inlined_call_operand.vmem [shape: f32[16,128], index: 4, kind: output, shape index: {}]  }
   0x1   :  { %v211_v0 = vld [vmem:[%s298_s0 + $0x38] sm:$0xff]  ;;  %v210_v1 = vld [vmem:[%s298_s0 + $0x30] sm:$0xff]  ;;  %v212_v2 = vld [vmem:[%s298_s0 + $0x40] sm:$0xff]  ;;  %214 = vset.pattern.permute.xlu0 %v215_v4 }
   0x2   :  { %117 = vmatpush.bf16.msra.mxu0 %v211_v0  ;;  %v202_v3 = vld [vmem:[%s299_s1 + $0x4] sm:$0xf]  ;;  %v161_v5 = vld [vmem:[%s299_s1 + $0x8] sm:$0xf0]  ;;  %138 = vmatpush.bf16.msra.mxu1 %v212_v2  ;;  %v207_v11 = vld [vmem:[%s298_s0 + $0x18] sm:$0xff] }
   0x3   :  { %v164_v6 = vor.u32 %v202_v3, %v161_v5  ;;  %v38_v7 = vld [vmem:[%s300_s2] sm:$0xff]  ;;  %v209_v8 = vld [vmem:[%s298_s0 + $0x28] sm:$0xff]  ;;  %v206_v12 = vld [vmem:[%s298_s0 + $0x10] sm:$0xff] }
   0x4   :  { %42 = vperm.xlu0 %214, %v38_v7   ;;  %v208_v9 = vld [vmem:[%s298_s0 + $0x20] sm:$0xff]  ;;  %v39_v10 = vld [vmem:[%s300_s2 + $0x8] sm:$0xff] }
   0x5   :  { %201 = vmatmul.msk.bf16.vlgmr.msra.gmra.mxu1 %vm113_vm0, %v164_v6  ;;  %v205_v13 = vld [vmem:[%s298_s0 + $0x8] sm:$0xff]  ;;  %v204_v14 = vld [vmem:[%s298_s0] sm:$0xff] }
   0x6   :  { %118 = vmatpush.bf16.msra.mxu0 %v210_v1  ;;  %v159_v15 = vld [vmem:[%s299_s1] sm:$0xf]  ;;  %v203_v16 = vld [vmem:[%s299_s1 + $0x4] sm:$0xf0] }
   0x7   :  { %v160_v17 = vor.u32 %v203_v16, %v159_v15  ;;  %v145_v22 = vld [vmem:[%s301_s3] sm:$0xff]  ;;  %v146_v30 = vld [vmem:[%s301_s3 + $0x8] sm:$0xff] }
   0xa   :  { %119 = vmatpush.bf16.msra.mxu0 %v209_v8 }
   0xc   :  { %47 = vperm.xlu0 %214, %v39_v10  }
   0xe   :  { %120 = vmatpush.bf16.msra.mxu0 %v208_v9 }
  0x12   :  { %121 = vmatpush.bf16.msra.mxu0 %v207_v11 }
  0x16   :  { %122 = vmatpush.bf16.msra.mxu0 %v206_v12 }
  0x1a   :  { %123 = vmatpush.bf16.msra.mxu0 %v205_v13 }
  0x1e   :  { %124 = vmatpush.bf16.msra.mxu0 %v204_v14 }
  0x21   :  { %125 = vmatmul.bf16.vlgmr.msra.gmra.mxu0 %v160_v17 }
  0x76   :  { %v43_v18 = vpop.permute.xlu0 %42 }
  0x7e   :  { %v48_v26 = vpop.permute.xlu0 %47 }
  0x82   :  { %v140_v19 = vpop.f32.mrf.mxu1 }
  0x8a   :  { %v142_v29 = vpop.f32.mrf.mxu1 }
  0x9e   :  { %v126_v20 = vpop.f32.mrf.mxu0 }
  0x9f   :  { %v127_v21 = vadd.f32 %v126_v20, %v43_v18 }
  0xa1   :  { %v141_v23 = vadd.f32 %v140_v19, %v127_v21 }
  0xa3   :  { %v147_v24 = vadd.f32 %v145_v22, %v141_v23 }
  0xa5   :  { %v149_v25 = vmax.f32 %v147_v24, 0.0 }
  0xa6   :  { %v128_v27 = vpop.f32.mrf.mxu0 }
  0xa7   :  { %151 = vst [vmem:[%s302_s4] sm:$0xff] %v149_v25  ;;  %v129_v28 = vadd.f32 %v128_v27, %v48_v26 }
  0xa9   :  { %v143_v31 = vadd.f32 %v142_v29, %v129_v28 }
  0xab   :  { %v148_v32 = vadd.f32 %v146_v30, %v143_v31 }
  0xad   :  { %v150_v33 = vmax.f32 %v148_v32, 0.0 }
  0xaf   :  { %152 = vst [vmem:[%s302_s4 + $0x8] sm:$0xff] %v150_v33 }

</bundles_post_ra>
